<compile_context>
chip_gen: v7x
topology: tpu7x:2x2x1
jax: 0.10.0
libtpu: 0.0.40
codegen_flags: <defaults>
</compile_context>

<pallas_src>
import jax
import jax.numpy as jnp
from jax import lax
from jax.experimental import pallas as pl
from jax.experimental.pallas import tpu as pltpu


_EPS = 1e-8  # torch.cosine_similarity default eps

# Flipped to False (once) if the installed Mosaic cannot lower the lane-dense
# output kernel; the column-layout fallback is then used for all later calls.
_LANE_DENSE_OUT = True


# ----------------------------- kernels ---------------------------------------

def _cosine_sim_column(e1_ref, e2_ref):
    """Per-row cosine similarity of the current block as an f32 (TB, 1) column."""
    e1 = e1_ref[...].astype(jnp.float32)              # (TB, D)
    e2 = e2_ref[...].astype(jnp.float32)              # (TB, D)

    dot = jnp.sum(e1 * e2, axis=-1, keepdims=True)    # (TB, 1)
    s1 = jnp.sum(e1 * e1, axis=-1, keepdims=True)     # (TB, 1)
    s2 = jnp.sum(e2 * e2, axis=-1, keepdims=True)     # (TB, 1)

    # torch: (x / max(||x||, eps)) . (y / max(||y||, eps))
    #      == dot * rsqrt(max(s1, eps^2)) * rsqrt(max(s2, eps^2))
    # (sqrt is monotone so the clamp commutes).  Two EUP rsqrts (separate issue
    # slot, essentially free in a memory-bound kernel) replace sqrt+sqrt+divide
    # and avoid overflow of s1*s2 for extreme-norm rows.
    eps2 = jnp.float32(_EPS * _EPS)
    inv1 = lax.rsqrt(jnp.maximum(s1, eps2))
    inv2 = lax.rsqrt(jnp.maximum(s2, eps2))
    return dot * inv1 * inv2                           # (TB, 1)


def _cosine_loss_kernel_lane_dense(e1_ref, e2_ref, lab_ref, out_ref):
    # lab_ref / out_ref are lane-dense (TB,) rows: unmasked full-lane stores,
    # tail math on ~TB/128 vregs, no (TB,128) lane-padded VMEM buffers.
    sim = _cosine_sim_column(e1_ref, e2_ref)           # (TB, 1)
    diff = sim[:, 0] - lab_ref[...]                    # one small sublane->lane relayout
    out_ref[...] = diff * diff


def _cosine_loss_kernel_column(e1_ref, e2_ref, lab_ref, out_ref):
    # Fallback layout: (TB, 1) column labels/output (always lowers).
    sim = _cosine_sim_column(e1_ref, e2_ref)           # (TB, 1)
    diff = sim - lab_ref[...]
    out_ref[...] = diff * diff


# ----------------------------- wrapper ----------------------------------------

def _round_up(x, m):
    return ((x + m - 1) // m) * m


def _choose_tb(B, D, itemsize, *, per_buffer_bytes, target_steps=8,
               min_rows=128, max_tb=4096):
    """Batch-tile size.

    Largest tile whose per-input pipeline buffer fits `per_buffer_bytes`, shrunk
    so the grid gets >= target_steps steps when the batch allows it (>= 2-4
    double-buffered steps per v7x TensorCore), but never below min_rows
    (amortize ~0.35 us/step overhead) and never above the 8-row-padded batch.
    """
    row_bytes = max(D * itemsize, 1)
    tb_vmem = max(8, min(max_tb, (per_buffer_bytes // row_bytes) // 8 * 8))
    tb_steps = max(min_rows, _round_up(pl.cdiv(B, target_steps), 8))
    return max(8, min(tb_vmem, tb_steps, _round_up(B, 8)))


def _pallas_cosine_loss(emb1, emb2, labels_flat, *, tb, lane_dense,
                        buffer_depth, vmem_limit, cost):
    B, D = emb1.shape
    grid = pl.cdiv(B, tb)
    b_pad = grid * tb

    # Only the tiny labels vector is padded; the embeddings are consumed in
    # place (Pallas handles the ragged last block; garbage tail rows only feed
    # outputs that are sliced off below).
    lab = labels_flat
    if b_pad != B:
        lab = jnp.pad(lab, (0, b_pad - B))

    if buffer_depth is None:
        emb_spec = pl.BlockSpec((tb, D), lambda i: (i, 0))
    else:
        # Optional deeper pipelining (e.g. 3 on v5e/v6e with 128 MiB VMEM).
        emb_spec = pl.BlockSpec((tb, D), lambda i: (i, 0),
                                pipeline_mode=pl.Buffered(int(buffer_depth)))

    if lane_dense:
        lab2d = lab.reshape(grid, tb)                    # lane-dense (1, tb) blocks
        vec_spec = pl.BlockSpec((None, tb), lambda i: (i, 0))
        out_shape = jax.ShapeDtypeStruct((grid, tb), jnp.float32)
        kernel = _cosine_loss_kernel_lane_dense
    else:
        lab2d = lab.reshape(b_pad, 1)                    # column (tb, 1) blocks
        vec_spec = pl.BlockSpec((tb, 1), lambda i: (i, 0))
        out_shape = jax.ShapeDtypeStruct((b_pad, 1), jnp.float32)
        kernel = _cosine_loss_kernel_column

    out = pl.pallas_call(
        kernel,
        out_shape=out_shape,
        grid=(grid,),
        in_specs=[emb_spec, emb_spec, vec_spec],
        out_specs=vec_spec,
        compiler_params=pltpu.CompilerParams(
            dimension_semantics=("parallel",),
            vmem_limit_bytes=vmem_limit,
        ),
        cost_estimate=cost,
    )(emb1, emb2, lab2d)
    return out.reshape(b_pad)[:B]


def cosine_similarity_loss(emb1, emb2, labels, *, tb=None,
                           per_buffer_bytes=6 << 20, buffer_depth=None):
    """(cosine_similarity(emb1, emb2, eps=1e-8) - labels)**2 per pair -> [B] f32.

    emb1, emb2: [B, D] in any float dtype (bf16 streams straight in and halves
    the dominant HBM read; math is f32 inside).  The kernel is HBM-read bound
    (reads 2*B*D bytes, writes 4*B), so `per_buffer_bytes` sizes the batch tile:
    6 MiB is safe on every generation (v7x has only 64 MiB VMEM) and already
    sits on the bandwidth plateau; on v5e/v6e (128 MiB VMEM) it can be raised to
    12-16 MiB and/or buffer_depth=3 for a few extra percent.
    """
    B, D = emb1.shape
    assert emb2.shape == (B, D), (emb1.shape, emb2.shape)
    itemsize = jnp.dtype(emb1.dtype).itemsize
    if tb is None:
        tb = _choose_tb(B, D, itemsize, per_buffer_bytes=per_buffer_bytes)

    labels_flat = labels.reshape(-1).astype(jnp.float32)

    depth = 2 if buffer_depth is None else int(buffer_depth)
    # Footprint estimate uses the larger (column-layout) labels/out buffers so
    # the declared limit is never below the real requirement of either layout.
    need = (2 * depth * tb * D * itemsize            # two embedding inputs
            + 2 * depth * tb * 128 * 4               # labels + output buffers
            + (2 << 20))                             # compiler scratch slack
    vmem_limit = int(max(need, 16 << 20))            # v5e default scoped cap is 16 MiB

    cost = pl.CostEstimate(
        flops=6 * B * D + 10 * B,
        transcendentals=2 * B,
        bytes_accessed=2 * B * D * itemsize + 8 * B,
    )

    kwargs = dict(tb=tb, buffer_depth=buffer_depth, vmem_limit=vmem_limit, cost=cost)
    global _LANE_DENSE_OUT
    if _LANE_DENSE_OUT:
        try:
            return _pallas_cosine_loss(emb1, emb2, labels_flat,
                                       lane_dense=True, **kwargs)
        except Exception:
            # Older Mosaic without the small column->row relayout: fall back to
            # the column-layout kernel for this and all subsequent calls.
            _LANE_DENSE_OUT = False
    return _pallas_cosine_loss(emb1, emb2, labels_flat, lane_dense=False, **kwargs)


# ---- tiny deterministic "sentence encoder" (stand-in for self.model) --------

def tiny_sentence_encoder(sentence_feature, params):
    """{'token_embeddings': [B, S, H]} -> {'sentence_embedding': [B, D]}.

    Stand-in for the external sentence-transformer `self.model`.  In production
    emit the embedding in bf16 here (the kernel upcasts internally): that halves
    the loss kernel's dominant HBM read, whereas a wrapper-side f32->bf16 cast
    would itself cost a full read+write and win nothing.
    """
    tok = sentence_feature["token_embeddings"]
    pooled = jnp.mean(tok, axis=1)                      # mean pooling over seq
    return {"sentence_embedding": pooled @ params["W"] + params["b"]}


def cosine_similarity_loss_module(sentence_features, labels, params):
    """Mirrors CosineSimilarityLoss.forward (no reduction -> returns [B])."""
    embeddings = [tiny_sentence_encoder(sf, params)["sentence_embedding"]
                  for sf in sentence_features]
    emb1, emb2 = embeddings
    return cosine_similarity_loss(emb1, emb2, labels)


# ------------------------------- self-test ------------------------------------

if __name__ == "__main__":
    key = jax.random.PRNGKey(0)
    (k_w, k_b, k_t1, k_t2, k_lab,
     k_e1, k_e2, k_lab2, k_e3, k_e4) = jax.random.split(key, 10)

    def ref_loss(e1, e2, lab):
        e1 = e1.astype(jnp.float32)
        e2 = e2.astype(jnp.float32)
        dot = jnp.sum(e1 * e2, axis=-1)
        n1 = jnp.maximum(jnp.linalg.norm(e1, axis=-1), _EPS)
        n2 = jnp.maximum(jnp.linalg.norm(e2, axis=-1), _EPS)
        return (dot / (n1 * n2) - lab.reshape(-1)) ** 2

    # ---- path 1: f32 through the tiny encoder; B not a multiple of 8 --------
    B, S, H, D = 12, 8, 32, 32
    params = {
        "W": jax.random.normal(k_w, (H, D), dtype=jnp.float32) * 0.1,
        "b": jax.random.normal(k_b, (D,), dtype=jnp.float32) * 0.01,
    }
    sentence_features = [
        {"token_embeddings": jax.random.normal(k_t1, (B, S, H), dtype=jnp.float32)},
        {"token_embeddings": jax.random.normal(k_t2, (B, S, H), dtype=jnp.float32)},
    ]
    labels = jax.random.uniform(k_lab, (B,), dtype=jnp.float32)

    loss = jax.block_until_ready(
        cosine_similarity_loss_module(sentence_features, labels, params))
    e1 = tiny_sentence_encoder(sentence_features[0], params)["sentence_embedding"]
    e2 = tiny_sentence_encoder(sentence_features[1], params)["sentence_embedding"]
    assert loss.shape == (B,)
    assert jnp.allclose(loss, ref_loss(e1, e2, labels), atol=1e-5, rtol=1e-5)

    # ---- path 2: bf16 embeddings straight into the kernel (HBM fast path) ---
    B2, D2 = 10, 64
    e1b = jax.random.normal(k_e1, (B2, D2), dtype=jnp.float32).astype(jnp.bfloat16)
    e2b = jax.random.normal(k_e2, (B2, D2), dtype=jnp.float32).astype(jnp.bfloat16)
    lab2 = jax.random.uniform(k_lab2, (B2,), dtype=jnp.float32)
    loss_b = jax.block_until_ready(cosine_similarity_loss(e1b, e2b, lab2))
    assert loss_b.shape == (B2,)
    assert jnp.allclose(loss_b, ref_loss(e1b, e2b, lab2), atol=1e-4, rtol=1e-4)

    # ---- path 3: multi-block grid with a ragged tail, NO embedding padding --
    B3, D3, TB3 = 200, 256, 64          # grid = 4 blocks, last block 8/64 rows valid
    e1c = jax.random.normal(k_e3, (B3, D3), dtype=jnp.float32)
    e2c = jax.random.normal(k_e4, (B3, D3), dtype=jnp.float32)
    lab3 = jax.random.uniform(k_lab, (B3,), dtype=jnp.float32)
    loss_c = jax.block_until_ready(cosine_similarity_loss(e1c, e2c, lab3, tb=TB3))
    assert loss_c.shape == (B3,)
    assert jnp.allclose(loss_c, ref_loss(e1c, e2c, lab3), atol=1e-5, rtol=1e-5)

    print("KERNEL_OK")
</pallas_src>

<mosaic_0001>
module attributes {stable_mosaic.version = 11 : i64} {
  func.func @_cosine_loss_kernel_lane_dense(%arg0: i32, %arg1: memref<16x32xf32, #tpu.memory_space<vmem>>, %arg2: memref<16x32xf32, #tpu.memory_space<vmem>>, %arg3: memref<1x16xf32, #tpu.memory_space<vmem>>, %arg4: memref<1x16xf32, #tpu.memory_space<vmem>>) attributes {dimension_semantics = [#tpu.dimension_semantics<parallel>], iteration_bounds = array<i64: 1>, scalar_prefetch = 0 : i64, scratch_operands = 0 : i64, tpu.core_type = #tpu.core_type<tc>, window_params = [{transform_indices = @transform_0, window_bounds = array<i64: 16, 32>}, {transform_indices = @transform_1, window_bounds = array<i64: 16, 32>}, {transform_indices = @transform_2, window_bounds = array<i64: 1, 16>}, {transform_indices = @transform_3, window_bounds = array<i64: 1, 16>}]} {
    %c0 = arith.constant 0 : index
    %c0_0 = arith.constant 0 : index
    %0 = vector.load %arg1[%c0, %c0_0] : memref<16x32xf32, #tpu.memory_space<vmem>>, vector<16x32xf32>
    %c0_1 = arith.constant 0 : index
    %c0_2 = arith.constant 0 : index
    %1 = vector.load %arg2[%c0_1, %c0_2] : memref<16x32xf32, #tpu.memory_space<vmem>>, vector<16x32xf32>
    %2 = arith.mulf %0, %1 : vector<16x32xf32>
    %cst = arith.constant dense<0.000000e+00> : vector<16xf32>
    %3 = vector.multi_reduction <add>, %2, %cst [1] : vector<16x32xf32> to vector<16xf32>
    %4 = vector.shape_cast %3 : vector<16xf32> to vector<16x1xf32>
    %5 = arith.mulf %0, %0 : vector<16x32xf32>
    %cst_3 = arith.constant dense<0.000000e+00> : vector<16xf32>
    %6 = vector.multi_reduction <add>, %5, %cst_3 [1] : vector<16x32xf32> to vector<16xf32>
    %7 = vector.shape_cast %6 : vector<16xf32> to vector<16x1xf32>
    %8 = arith.mulf %1, %1 : vector<16x32xf32>
    %cst_4 = arith.constant dense<0.000000e+00> : vector<16xf32>
    %9 = vector.multi_reduction <add>, %8, %cst_4 [1] : vector<16x32xf32> to vector<16xf32>
    %10 = vector.shape_cast %9 : vector<16xf32> to vector<16x1xf32>
    %cst_5 = arith.constant 1.000000e-16 : f32
    %11 = vector.broadcast %cst_5 : f32 to vector<16x1xf32>
    %12 = arith.maximumf %7, %11 : vector<16x1xf32>
    %13 = math.rsqrt %12 : vector<16x1xf32>
    %cst_6 = arith.constant 1.000000e-16 : f32
    %14 = vector.broadcast %cst_6 : f32 to vector<16x1xf32>
    %15 = arith.maximumf %10, %14 : vector<16x1xf32>
    %16 = math.rsqrt %15 : vector<16x1xf32>
    %17 = arith.mulf %4, %13 : vector<16x1xf32>
    %18 = arith.mulf %17, %16 : vector<16x1xf32>
    %19 = vector.shape_cast %18 : vector<16x1xf32> to vector<16xf32>
    %c0_7 = arith.constant 0 : index
    %c0_8 = arith.constant 0 : index
    %20 = vector.load %arg3[%c0_7, %c0_8] : memref<1x16xf32, #tpu.memory_space<vmem>>, vector<1x16xf32>
    %21 = vector.shape_cast %20 : vector<1x16xf32> to vector<16xf32>
    %22 = arith.subf %19, %21 : vector<16xf32>
    %23 = arith.mulf %22, %22 : vector<16xf32>
    %c0_9 = arith.constant 0 : index
    %c0_10 = arith.constant 0 : index
    %24 = vector.load %arg4[%c0_9, %c0_10] : memref<1x16xf32, #tpu.memory_space<vmem>>, vector<1x16xf32>
    %25 = vector.shape_cast %24 : vector<1x16xf32> to vector<16xf32>
    %26 = vector.shape_cast %23 : vector<16xf32> to vector<1x16xf32>
    tpu.vector_store %arg4[%c0_9, %c0_10], %26 {strides = array<i32>} : memref<1x16xf32, #tpu.memory_space<vmem>>, vector<1x16xf32>,
    return
  }
  func.func @transform_0(%arg0: i32) -> (i32, i32) {
    %c0_i32 = arith.constant 0 : i32
    %c0_i32_0 = arith.constant 0 : i32
    return %arg0, %c0_i32 : i32, i32
  }
  func.func @transform_1(%arg0: i32) -> (i32, i32) {
    %c0_i32 = arith.constant 0 : i32
    %c0_i32_0 = arith.constant 0 : i32
    return %arg0, %c0_i32 : i32, i32
  }
  func.func @transform_2(%arg0: i32) -> (i32, i32) {
    %c0_i32 = arith.constant 0 : i32
    %c0_i32_0 = arith.constant 0 : i32
    return %arg0, %c0_i32 : i32, i32
  }
  func.func @transform_3(%arg0: i32) -> (i32, i32) {
    %c0_i32 = arith.constant 0 : i32
    %c0_i32_0 = arith.constant 0 : i32
    return %arg0, %c0_i32 : i32, i32
  }
}

module attributes {stable_mosaic.version = 11 : i64} {
  func.func @_cosine_loss_kernel_column(%arg0: i32, %arg1: memref<16x32xf32, #tpu.memory_space<vmem>>, %arg2: memref<16x32xf32, #tpu.memory_space<vmem>>, %arg3: memref<16x1xf32, #tpu.memory_space<vmem>>, %arg4: memref<16x1xf32, #tpu.memory_space<vmem>>) attributes {dimension_semantics = [#tpu.dimension_semantics<parallel>], iteration_bounds = array<i64: 1>, scalar_prefetch = 0 : i64, scratch_operands = 0 : i64, tpu.core_type = #tpu.core_type<tc>, window_params = [{transform_indices = @transform_0, window_bounds = array<i64: 16, 32>}, {transform_indices = @transform_1, window_bounds = array<i64: 16, 32>}, {transform_indices = @transform_2, window_bounds = array<i64: 16, 1>}, {transform_indices = @transform_3, window_bounds = array<i64: 16, 1>}]} {
    %c0 = arith.constant 0 : index
    %c0_0 = arith.constant 0 : index
    %0 = vector.load %arg1[%c0, %c0_0] : memref<16x32xf32, #tpu.memory_space<vmem>>, vector<16x32xf32>
    %c0_1 = arith.constant 0 : index
    %c0_2 = arith.constant 0 : index
    %1 = vector.load %arg2[%c0_1, %c0_2] : memref<16x32xf32, #tpu.memory_space<vmem>>, vector<16x32xf32>
    %2 = arith.mulf %0, %1 : vector<16x32xf32>
    %cst = arith.constant dense<0.000000e+00> : vector<16xf32>
    %3 = vector.multi_reduction <add>, %2, %cst [1] : vector<16x32xf32> to vector<16xf32>
    %4 = vector.shape_cast %3 : vector<16xf32> to vector<16x1xf32>
    %5 = arith.mulf %0, %0 : vector<16x32xf32>
    %cst_3 = arith.constant dense<0.000000e+00> : vector<16xf32>
    %6 = vector.multi_reduction <add>, %5, %cst_3 [1] : vector<16x32xf32> to vector<16xf32>
    %7 = vector.shape_cast %6 : vector<16xf32> to vector<16x1xf32>
    %8 = arith.mulf %1, %1 : vector<16x32xf32>
    %cst_4 = arith.constant dense<0.000000e+00> : vector<16xf32>
    %9 = vector.multi_reduction <add>, %8, %cst_4 [1] : vector<16x32xf32> to vector<16xf32>
    %10 = vector.shape_cast %9 : vector<16xf32> to vector<16x1xf32>
    %cst_5 = arith.constant 1.000000e-16 : f32
    %11 = vector.broadcast %cst_5 : f32 to vector<16x1xf32>
    %12 = arith.maximumf %7, %11 : vector<16x1xf32>
    %13 = math.rsqrt %12 : vector<16x1xf32>
    %cst_6 = arith.constant 1.000000e-16 : f32
    %14 = vector.broadcast %cst_6 : f32 to vector<16x1xf32>
    %15 = arith.maximumf %10, %14 : vector<16x1xf32>
    %16 = math.rsqrt %15 : vector<16x1xf32>
    %17 = arith.mulf %4, %13 : vector<16x1xf32>
    %18 = arith.mulf %17, %16 : vector<16x1xf32>
    %c0_7 = arith.constant 0 : index
    %c0_8 = arith.constant 0 : index
    %19 = vector.load %arg3[%c0_7, %c0_8] : memref<16x1xf32, #tpu.memory_space<vmem>>, vector<16x1xf32>
    %20 = arith.subf %18, %19 : vector<16x1xf32>
    %21 = arith.mulf %20, %20 : vector<16x1xf32>
    %c0_9 = arith.constant 0 : index
    %c0_10 = arith.constant 0 : index
    %22 = vector.load %arg4[%c0_9, %c0_10] : memref<16x1xf32, #tpu.memory_space<vmem>>, vector<16x1xf32>
    tpu.vector_store %arg4[%c0_9, %c0_10], %21 {strides = array<i32>} : memref<16x1xf32, #tpu.memory_space<vmem>>, vector<16x1xf32>,
    return
  }
  func.func @transform_0(%arg0: i32) -> (i32, i32) {
    %c0_i32 = arith.constant 0 : i32
    %c0_i32_0 = arith.constant 0 : i32
    return %arg0, %c0_i32 : i32, i32
  }
  func.func @transform_1(%arg0: i32) -> (i32, i32) {
    %c0_i32 = arith.constant 0 : i32
    %c0_i32_0 = arith.constant 0 : i32
    return %arg0, %c0_i32 : i32, i32
  }
  func.func @transform_2(%arg0: i32) -> (i32, i32) {
    %c0_i32 = arith.constant 0 : i32
    %c0_i32_0 = arith.constant 0 : i32
    return %arg0, %c0_i32 : i32, i32
  }
  func.func @transform_3(%arg0: i32) -> (i32, i32) {
    %c0_i32 = arith.constant 0 : i32
    %c0_i32_0 = arith.constant 0 : i32
    return %arg0, %c0_i32 : i32, i32
  }
}

</mosaic_0001>

<bundles_post_ra>
// kernel: tpu_custom_call.1
= control target key start
LH: loop header
LB: loop body
LE: loop exit
PB: predicated region body
PF: predicated region fallthrough
CT: control target
= control target key end

     0   :  { %8 = vsyncpa [#allocation3], 0  ;;  %s303_s0 = inlined_call_operand.hbm [shape: f32[12,32], index: 0, kind: input, shape index: {}]   ;;  %s304_s1 = inlined_call_operand.hbm [shape: f32[12,32], index: 1, kind: input, shape index: {}]   ;;  %s305_s2 = inlined_call_operand.vmem [shape: f32[1,16], index: 2, kind: input, shape index: {}]   ;;  %s306_s3 = inlined_call_operand.hbm [shape: f32[1,16], index: 3, kind: output, shape index: {}]  }
   0x1   :  { %9 = vsyncpa [#allocation6], 0 }
   0x2   :  { %10 = vsyncpa [#allocation4], 0  ;;  %s232_s12 = smov [#allocation2]   ;;  %s160_s16 = scalar_lea.hbm %s303_s0, 256 }
   0x3   :  { %s16_s13 = sshll.u32 %s232_s12, 4  ;;  %p161_p0 = scmp.ne.s32.totalorder %s303_s0, %s160_s16  ;;  %s17_s13 = int_to_ptr.vmem [resolvable:$true] %s16_s13 }
   0x4   :  { %p164_p1 = scmp.lt.u32.totalorder %s160_s16, %s303_s0 }
   0x6   :  { %p166_p2 = pnand %p164_p1, %p161_p0 }
   0x8   :  { %169 = shalt.err (!%p166_p2)
}
   0x9   :  { %s170_s21 = scalar_lea.vmem %s17_s13, 256  ;;  %p175_p4 = scmp.lt.s32.totalorder %s17_s13, %s17_s13 }
   0xa   :  { %p171_p3 = scmp.ne.s32.totalorder %s17_s13, %s170_s21  ;;  %p176_p5 = scmp.lt.s32.totalorder %s170_s21, %s170_s21 }
   0xc   :  { %p177_p6 = por %p176_p5, %p175_p4 }
   0xe   :  { %p178_p7 = pnand %p177_p6, %p171_p3 }
  0x10   :  { %181 = shalt.err (!%p178_p7)
}
  0x11   :  { %s233_s22 = smov 128   ;;  %s234_s23 = smov 8  }
  0x12   :  { %22 = dma.hbm_to_vmem [thread:$0]  %s303_s0, 256, %s17_s13, [#allocation3], %s233_s22, %s233_s22, %s234_s23  }
  0x13   :  { %s235_s26 = smov [#allocation5]   ;;  %s182_s30 = scalar_lea.hbm %s304_s1, 256 }
  0x14   :  { %s28_s27 = sshll.u32 %s235_s26, 4  ;;  %p183_p8 = scmp.ne.s32.totalorder %s304_s1, %s182_s30  ;;  %s29_s27 = int_to_ptr.vmem [resolvable:$true] %s28_s27 }
  0x15   :  { %p186_p9 = scmp.lt.u32.totalorder %s182_s30, %s304_s1 }
  0x17   :  { %p188_p10 = pnand %p186_p9, %p183_p8 }
  0x19   :  { %191 = shalt.err (!%p188_p10)
}
  0x1a   :  { %s192_s8 = scalar_lea.vmem %s29_s27, 256  ;;  %p197_p12 = scmp.lt.s32.totalorder %s29_s27, %s29_s27 }
  0x1b   :  { %p193_p11 = scmp.ne.s32.totalorder %s29_s27, %s192_s8  ;;  %p198_p13 = scmp.lt.s32.totalorder %s192_s8, %s192_s8 }
  0x1d   :  { %p199_p0 = por %p198_p13, %p197_p12 }
  0x1f   :  { %p200_p1 = pnand %p199_p0, %p193_p11 }
  0x21   :  { %203 = shalt.err (!%p200_p1)
}
  0x22   :  { %34 = dma.hbm_to_vmem [thread:$0]  %s304_s1, 256, %s29_s27, [#allocation6], %s233_s22, %s233_s22, %s234_s23  }
  0x23   :  { %226 = dma.done.wait [#allocation3], 256  }
  0x24   :  { %227 = vsyncadd [#allocation3], 4294967040 }
  0x25   :  { %228 = dma.done.wait [#allocation6], 256  }
  0x26   :  { %229 = vsyncadd [#allocation6], 4294967040  ;;  %v43_v0 = vld [vmem:[#allocation2] sm:$0xff]  ;;  %vm49_vm0 = vcmask 261120   ;;  %v45_v1 = vld [vmem:[#allocation5] sm:$0xff]  ;;  %v236_v17 = vmov 0   ;;  %v111_v42 = vlaneseq }
  0x27   :  { %v44_v2 = vld [vmem:[#allocation2 + $0x8] sm:$0xff]  ;;  %v56_v3 = vmul.f32 %v43_v0, %v43_v0  ;;  %v64_v4 = vmul.f32 %v45_v1, %v45_v1  ;;  %v46_v6 = vld [vmem:[#allocation5 + $0x8] sm:$0xff]  ;;  %v47_v12 = vmul.f32 %v45_v1, %v43_v0  ;;  %v143_v16 = vld [vmem:[%s305_s2] ss:$0 sm:$0xff]  ;;  %150 = vset.pattern.permute.xlu1 %v236_v17  ;;  %151 = vset.pattern.permute.xlu0 %v236_v17  ;;  %s237_s2 = smov [#allocation7]   ;;  %vm122_vm1 = vcmask 130112  }
  0x28   :  { %v57_v5 = vmul.f32 %v44_v2, %v44_v2  ;;  %v65_v7 = vmul.f32 %v46_v6, %v46_v6  ;;  %v48_v13 = vmul.f32 %v46_v6, %v44_v2  ;;  %v112_v43 = vand.u32 127, %v111_v42  ;;  %s133_s11 = sshll.u32 %s237_s2, 4  ;;  %s134_s11 = int_to_ptr.vmem [resolvable:$true] %s133_s11 }
  0x29   :  { %v58_v8 = vsel %vm49_vm0, %v56_v3, 0.0  ;;  %v66_v9 = vsel %vm49_vm0, %v64_v4, 0.0  ;;  %v50_v14 = vsel %vm49_vm0, %v47_v12, 0.0  ;;  %v114_v44 = vshrl.u32 %v111_v42, 7  ;;  %s204_s12 = scalar_lea.vmem %s134_s11, 16  ;;  %s208_s13 = scalar_lea.vmem %s134_s11, 32 }
  0x2a   :  { %59 = vadd.xlane.f32.xlu0 %v58_v8  ;;  %67 = vadd.xlane.f32.xlu1 %v66_v9  ;;  %v61_v10 = vsel %vm49_vm0, %v57_v5, 0.0  ;;  %v69_v11 = vsel %vm49_vm0, %v65_v7, 0.0  ;;  %v53_v15 = vsel %vm49_vm0, %v48_v13, 0.0  ;;  %v117_v45 = vadd.s32 4294967288, %v112_v43  ;;  %p205_p2 = scmp.ne.s32.totalorder %s134_s11, %s204_s12  ;;  %p209_p3 = scmp.lt.s32.totalorder %s134_s11, %s134_s11 }
  0x2b   :  { %v115_v47 = vsub.s32 %v112_v43, %v114_v44  ;;  %vm125_vm2 = vcmask 122880   ;;  %p210_p4 = scmp.lt.s32.totalorder %s208_s13, %s204_s12 }
  0x2c   :  { %v120_v48 = vsub.s32 %v117_v45, %v114_v44 }
  0x2d   :  { %p211_p5 = por %p210_p4, %p209_p3 }
  0x2e   :  { %62 = vadd.xlane.f32.xlu0 %v61_v10  ;;  %70 = vadd.xlane.f32.xlu1 %v69_v11 }
  0x2f   :  { %p212_p6 = pnand %p211_p5, %p205_p2 }
  0x32   :  { %51 = vadd.xlane.f32.xlu0 %v50_v14  ;;  %54 = vadd.xlane.f32.xlu1 %v53_v15 }
  0x43   :  { %95 = vbcast.lane.b32.xlu1 %v143_v16, 264 }
  0x48   :  { %91 = vbcast.lane.b32.xlu0 %v143_v16, 256 }
  0xb7   :  { %v60_v18 = vpop.xlane.xlu0 %59  ;;  %v68_v19 = vpop.xlane.xlu1 %67 }
  0xb8   :  { %v72_v20 = vmax.f32 %v60_v18, 1e-16  ;;  %v76_v21 = vmax.f32 %v68_v19, 1e-16 }
  0xba   :  { %152 = vrsqrt.f32 %v72_v20 }
  0xbb   :  { %154 = vrsqrt.f32 %v76_v21  ;;  %v63_v22 = vpop.xlane.xlu0 %62  ;;  %v71_v23 = vpop.xlane.xlu1 %70 }
  0xbc   :  { %v73_v24 = vmax.f32 %v63_v22, 1e-16  ;;  %v77_v25 = vmax.f32 %v71_v23, 1e-16 }
  0xbe   :  { %156 = vrsqrt.f32 %v73_v24 }
  0xbf   :  { %158 = vrsqrt.f32 %v77_v25  ;;  %v52_v26 = vpop.xlane.xlu0 %51  ;;  %v55_v28 = vpop.xlane.xlu1 %54 }
  0xc3   :  { %v92_v31 = vpop.permute.xlu0 %91  ;;  %v96_v37 = vpop.permute.xlu1 %95 }
  0xc4   :  { %v153_v27 = vpop.eup %152 }
  0xc5   :  { %v155_v29 = vpop.eup %154  ;;  %v80_v30 = vmul.f32 %v153_v27, %v52_v26 }
  0xc7   :  { %v82_v32 = vmul.f32 %v155_v29, %v80_v30 }
  0xc8   :  { %v157_v33 = vpop.eup %156 }
  0xc9   :  { %v159_v34 = vpop.eup %158  ;;  %v81_v35 = vmul.f32 %v157_v33, %v55_v28  ;;  %v99_v36 = vsub.f32 %v82_v32, %v92_v31 }
  0xcb   :  { %v101_v38 = vmul.f32 %v99_v36, %v99_v36  ;;  %v83_v39 = vmul.f32 %v159_v34, %v81_v35 }
  0xcd   :  { %v100_v40 = vsub.f32 %v83_v39, %v96_v37  ;;  %106 = vperm.xlu1 %150, %v101_v38  }
  0xcf   :  { %v102_v41 = vmul.f32 %v100_v40, %v100_v40 }
  0xd1   :  { %109 = vperm.xlu1 %150, %v102_v41  }
 0x14c   :  { %v107_v46 = vpop.permute.xlu1 %106 }
 0x14d   :  { %v116_v50 = vrot.slane %v107_v46, %v115_v47 }
 0x150   :  { %v110_v49 = vpop.permute.xlu1 %109 }
 0x151   :  { %v121_v51 = vrot.slane %v110_v49, %v120_v48 }
 0x153   :  { %v123_v52 = vsel %vm122_vm1, %v121_v51, %v116_v50 }
 0x154   :  { %126 = vst.msk [vmem:[#allocation7] sm:$0x1] %vm125_vm2, %v123_v52 }
 0x155   :  { %215 = shalt.err (!%p212_p6)
}
 0x156   :  { %s216_s16 = scalar_lea.hbm %s306_s3, 16 }
 0x157   :  { %p217_p7 = scmp.ne.s32.totalorder %s306_s3, %s216_s16  ;;  %p220_p8 = scmp.lt.u32.totalorder %s216_s16, %s306_s3 }
 0x159   :  { %p222_p9 = pnand %p220_p8, %p217_p7 }
 0x15b   :  { %225 = shalt.err (!%p222_p9)
}
 0x15c   :  { %136 = dma.vmem_to_hbm [thread:$0]  %s134_s11, 16, %s306_s3, [#allocation4]  }
 0x15d   :  { %230 = dma.done.wait [#allocation4], 16  }
 0x15e   :  { %231 = vsyncadd [#allocation4], 4294967280 }
 0x15f   :  { %140 = vsyncpa [#allocation3], 1 }
 0x160   :  { %141 = vsyncpa [#allocation6], 1 }
 0x161   :  { %142 = vsyncpa [#allocation4], 1 }

// kernel: tpu_custom_call.1
= control target key start
LH: loop header
LB: loop body
LE: loop exit
PB: predicated region body
PF: predicated region fallthrough
CT: control target
= control target key end

     0   :  { %8 = vsyncpa [#allocation3], 0  ;;  %s118_s12 = smov [#allocation2]   ;;  %s177_s0 = inlined_call_operand.vmem [shape: f32[12,32], index: 0, kind: input, shape index: {}]   ;;  %s178_s1 = inlined_call_operand.hbm [shape: f32[12,32], index: 1, kind: input, shape index: {}]   ;;  %s179_s2 = inlined_call_operand.vmem [shape: f32[16,1], index: 2, kind: input, shape index: {}]   ;;  %s180_s3 = inlined_call_operand.vmem [shape: f32[16,1], index: 3, kind: output, shape index: {}]  }
   0x1   :  { %s16_s13 = sshll.u32 %s118_s12, 4  ;;  %s94_s16 = scalar_lea.hbm %s178_s1, 256  ;;  %s17_s13 = int_to_ptr.vmem [resolvable:$true] %s16_s13 }
   0x2   :  { %p95_p0 = scmp.ne.s32.totalorder %s178_s1, %s94_s16  ;;  %p98_p1 = scmp.lt.u32.totalorder %s94_s16, %s178_s1 }
   0x4   :  { %p100_p2 = pnand %p98_p1, %p95_p0 }
   0x6   :  { %103 = shalt.err (!%p100_p2)
}
   0x7   :  { %s104_s21 = scalar_lea.vmem %s17_s13, 256  ;;  %p109_p4 = scmp.lt.s32.totalorder %s17_s13, %s17_s13 }
   0x8   :  { %p105_p3 = scmp.ne.s32.totalorder %s17_s13, %s104_s21  ;;  %p110_p5 = scmp.lt.s32.totalorder %s104_s21, %s104_s21 }
   0xa   :  { %p111_p6 = por %p110_p5, %p109_p4 }
   0xc   :  { %p112_p7 = pnand %p111_p6, %p105_p3 }
   0xe   :  { %115 = shalt.err (!%p112_p7)
}
   0xf   :  { %s119_s22 = smov 128   ;;  %s120_s23 = smov 8  }
  0x10   :  { %22 = dma.hbm_to_vmem [thread:$0]  %s178_s1, 256, %s17_s13, [#allocation3], %s119_s22, %s119_s22, %s120_s23  }
  0x11   :  { %116 = dma.done.wait [#allocation3], 256  }
  0x12   :  { %117 = vsyncadd [#allocation3], 4294967040  ;;  %v28_v0 = vld [vmem:[%s177_s0] sm:$0xff]  ;;  %vm34_vm0 = vcmask 261120   ;;  %v29_v2 = vld [vmem:[%s177_s0 + $0x8] sm:$0xff]  ;;  %vm75_vm1 = vcmask 7168  }
  0x13   :  { %v30_v1 = vld [vmem:[#allocation2] sm:$0xff]  ;;  %v41_v3 = vmul.f32 %v28_v0, %v28_v0  ;;  %v42_v5 = vmul.f32 %v29_v2, %v29_v2  ;;  %v31_v6 = vld [vmem:[#allocation2 + $0x8] sm:$0xff] }
  0x14   :  { %v49_v4 = vmul.f32 %v30_v1, %v30_v1  ;;  %v50_v7 = vmul.f32 %v31_v6, %v31_v6  ;;  %v32_v12 = vmul.f32 %v30_v1, %v28_v0  ;;  %v33_v13 = vmul.f32 %v31_v6, %v29_v2  ;;  %v69_v28 = vld [vmem:[%s179_s2] sm:$0xff]  ;;  %v70_v35 = vld [vmem:[%s179_s2 + $0x8] sm:$0xff] }
  0x15   :  { %v43_v8 = vsel %vm34_vm0, %v41_v3, 0.0  ;;  %v46_v10 = vsel %vm34_vm0, %v42_v5, 0.0 }
  0x16   :  { %v51_v9 = vsel %vm34_vm0, %v49_v4, 0.0  ;;  %44 = vadd.xlane.f32.xlu0 %v43_v8  ;;  %v54_v11 = vsel %vm34_vm0, %v50_v7, 0.0  ;;  %v35_v14 = vsel %vm34_vm0, %v32_v12, 0.0  ;;  %v38_v15 = vsel %vm34_vm0, %v33_v13, 0.0 }
  0x17   :  { %52 = vadd.xlane.f32.xlu1 %v51_v9 }
  0x1a   :  { %47 = vadd.xlane.f32.xlu0 %v46_v10 }
  0x1b   :  { %55 = vadd.xlane.f32.xlu1 %v54_v11 }
  0x1e   :  { %36 = vadd.xlane.f32.xlu0 %v35_v14 }
  0x1f   :  { %39 = vadd.xlane.f32.xlu1 %v38_v15 }
  0xa3   :  { %v45_v16 = vpop.xlane.xlu0 %44 }
  0xa4   :  { %v53_v17 = vpop.xlane.xlu1 %52  ;;  %v57_v18 = vmax.f32 %v45_v16, 1e-16 }
  0xa5   :  { %v61_v19 = vmax.f32 %v53_v17, 1e-16 }
  0xa6   :  { %86 = vrsqrt.f32 %v57_v18 }
  0xa7   :  { %88 = vrsqrt.f32 %v61_v19  ;;  %v48_v20 = vpop.xlane.xlu0 %47 }
  0xa8   :  { %v56_v21 = vpop.xlane.xlu1 %55  ;;  %v58_v22 = vmax.f32 %v48_v20, 1e-16 }
  0xa9   :  { %v62_v23 = vmax.f32 %v56_v21, 1e-16 }
  0xaa   :  { %90 = vrsqrt.f32 %v58_v22 }
  0xab   :  { %92 = vrsqrt.f32 %v62_v23  ;;  %v37_v24 = vpop.xlane.xlu0 %36 }
  0xac   :  { %v40_v29 = vpop.xlane.xlu1 %39 }
  0xb0   :  { %v87_v25 = vpop.eup %86 }
  0xb1   :  { %v89_v26 = vpop.eup %88  ;;  %v65_v27 = vmul.f32 %v87_v25, %v37_v24 }
  0xb3   :  { %v67_v30 = vmul.f32 %v89_v26, %v65_v27 }
  0xb4   :  { %v91_v31 = vpop.eup %90 }
  0xb5   :  { %v93_v32 = vpop.eup %92  ;;  %v71_v33 = vsub.f32 %v67_v30, %v69_v28  ;;  %v66_v34 = vmul.f32 %v91_v31, %v40_v29 }
  0xb7   :  { %v73_v36 = vmul.f32 %v71_v33, %v71_v33  ;;  %v68_v37 = vmul.f32 %v93_v32, %v66_v34 }
  0xb9   :  { %76 = vst.msk [vmem:[%s180_s3] sm:$0xff] %vm75_vm1, %v73_v36  ;;  %v72_v38 = vsub.f32 %v68_v37, %v70_v35 }
  0xbb   :  { %v74_v39 = vmul.f32 %v72_v38, %v72_v38 }
  0xbd   :  { %77 = vst.msk [vmem:[%s180_s3 + $0x8] sm:$0xff] %vm75_vm1, %v74_v39 }
  0xbe   :  { %82 = vsyncpa [#allocation3], 1 }

</bundles_post_ra>
